<compile_context>
chip_gen: v7x
topology: tpu7x:2x2x1
jax: 0.10.0
libtpu: 0.0.40
codegen_flags: <defaults>
</compile_context>

<pallas_src>
import jax
import jax.numpy as jnp
from jax import lax
from jax.experimental import pallas as pl
from jax.experimental.pallas import tpu as pltpu


def _round_up(n, m):
    return ((n + m - 1) // m) * m


def mlp_kernel(x_ref, w1_ref, b1_ref, w2_ref, b2_ref, o_ref, xpad_ref):
    f_in = x_ref.shape[1]            # 122 (raw feature extent)
    tb, kp = xpad_ref.shape          # (tb, 128) MXU-aligned staging tile

    # Cast the raw f32 x tile to bf16 and lane-pad 122 -> 128 through VMEM scratch.
    # The 6 pad lanes are zeroed every step (cheap) because with a 'parallel' grid
    # axis each TensorCore starts at a different program_id, so a one-time init
    # gated on program_id==0 would miss the second core.
    xpad_ref[:, f_in:] = jnp.zeros((tb, kp - f_in), xpad_ref.dtype)
    xpad_ref[:, :f_in] = x_ref[...].astype(xpad_ref.dtype)

    # Layer 1 on the MXU: [tb,128] bf16 @ [128,128] bf16 -> f32; bias + ReLU on VPU.
    h = jnp.dot(xpad_ref[...], w1_ref[...], preferred_element_type=jnp.float32)
    h = jnp.maximum(h + b1_ref[...], 0.0)

    # Layer 2, lane-dense NT matmul: [1,128] bf16 @ ([tb,128] bf16)^T -> [1,tb] f32.
    z = lax.dot_general(
        w2_ref[...], h.astype(jnp.bfloat16),
        dimension_numbers=(((1,), (1,)), ((), ())),
        preferred_element_type=jnp.float32,
    ) + b2_ref[0, 0]

    # Exact sigmoid (kernel is HBM-bound; exp + divide on EUP are free).
    o_ref[...] = 1.0 / (1.0 + jnp.exp(-z))


def mlp_forward(x, w1, b1, w2, b2, *, block_b=4096):
    """x: [B,122] f32; w1: [122,50]; b1: [50]; w2: [50,1]; b2: [1].
    Returns sigmoid(relu(x @ w1 + b1) @ w2 + b2), shape [B,1] f32."""
    B, f_in = x.shape
    f_in_w, hidden = w1.shape
    assert f_in == f_in_w

    K = _round_up(f_in, 128)      # 122 -> 128 (MXU-aligned contraction dim)
    H = _round_up(hidden, 128)    # 50  -> 128 (lane-aligned hidden dim)
    block_b = _round_up(block_b, 128)

    # Batch tiling: tb is either the full (tiny) batch or a multiple of 128.
    # Partial tail blocks are handled by Pallas block clipping / masked stores.
    if B <= 128 and B % 8 == 0:
        tb = B                                       # single full-extent block
    else:
        tb = block_b
        if B > 1024:
            # Give v7x's two TensorCores at least one block each.
            tb = min(tb, _round_up(pl.cdiv(B, 2), 128))
        tb = max(128, min(tb, _round_up(B, 128)))
    nb = pl.cdiv(B, tb)

    # Weights/biases are tiny: pad & cast once (zero pad rows/cols/entries are
    # inert through ReLU and layer 2).  x itself is NOT copied in the wrapper.
    w1_p = jnp.pad(w1, ((0, K - f_in), (0, H - hidden))).astype(jnp.bfloat16)
    b1_p = jnp.pad(b1.reshape(1, -1).astype(jnp.float32), ((0, 0), (0, H - hidden)))
    w2_row = jnp.pad(w2.reshape(1, -1).astype(jnp.float32),
                     ((0, 0), (0, H - hidden))).astype(jnp.bfloat16)
    b2_s = b2.reshape(1, 1).astype(jnp.float32)

    cost = pl.CostEstimate(
        flops=2 * B * (K * H + H),
        transcendentals=B,
        bytes_accessed=(B * f_in * x.dtype.itemsize) + B * 4
                       + w1_p.size * 2 + b1_p.size * 4 + w2_row.size * 2 + 4,
    )

    out = pl.pallas_call(
        mlp_kernel,
        out_shape=jax.ShapeDtypeStruct((1, B), jnp.float32),
        grid=(nb,),
        in_specs=[
            pl.BlockSpec((tb, f_in), lambda i: (i, 0)),          # raw x tile (pipelined)
            pl.BlockSpec((K, H), lambda i: (0, 0)),              # w1: VMEM-resident
            pl.BlockSpec((1, H), lambda i: (0, 0)),              # b1: VMEM-resident
            pl.BlockSpec((1, H), lambda i: (0, 0)),              # w2 row: VMEM-resident
            pl.BlockSpec(memory_space=pltpu.MemorySpace.SMEM),   # b2 scalar in SMEM
        ],
        out_specs=pl.BlockSpec((1, tb), lambda i: (0, i)),       # lane-dense output
        scratch_shapes=[pltpu.VMEM((tb, K), jnp.bfloat16)],      # x cast/pad staging
        compiler_params=pltpu.CompilerParams(
            dimension_semantics=("parallel",),
            vmem_limit_bytes=32 * 1024 * 1024,
        ),
        cost_estimate=cost,
    )(x, w1_p, b1_p, w2_row, b2_s)

    return out.reshape(B, 1)


def mlp_reference(x, w1, b1, w2, b2):
    h = jnp.maximum(x @ w1 + b1.reshape(1, -1), 0.0)
    z = h @ w2 + b2.reshape(1, 1)
    return 1.0 / (1.0 + jnp.exp(-z))


def init_params(key):
    # Mimic nn.Linear default init: U(-1/sqrt(fan_in), 1/sqrt(fan_in)).
    k1, k2, k3, k4 = jax.random.split(key, 4)
    in1, out1 = 122, 50
    in2, out2 = 50, 1
    bound1 = 1.0 / jnp.sqrt(jnp.float32(in1))
    bound2 = 1.0 / jnp.sqrt(jnp.float32(in2))
    w1 = jax.random.uniform(k1, (in1, out1), jnp.float32, -bound1, bound1)
    b1 = jax.random.uniform(k2, (out1,), jnp.float32, -bound1, bound1)
    w2 = jax.random.uniform(k3, (in2, out2), jnp.float32, -bound2, bound2)
    b2 = jax.random.uniform(k4, (out2,), jnp.float32, -bound2, bound2)
    return w1, b1, w2, b2


if __name__ == "__main__":
    key = jax.random.PRNGKey(0)
    k_params, k_x1, k_x2, k_x3 = jax.random.split(key, 4)
    w1, b1, w2, b2 = init_params(k_params)

    # Case 1: tiny batch -> single full-extent block (tb == B).
    x_small = jax.random.normal(k_x1, (32, 122), jnp.float32)
    out_small = jax.block_until_ready(mlp_forward(x_small, w1, b1, w2, b2))
    ref_small = mlp_reference(x_small, w1, b1, w2, b2)
    assert out_small.shape == (32, 1)
    assert jnp.allclose(out_small, ref_small, atol=1e-2)   # bf16 MXU path

    # Case 2: multi-block grid with a partial tail block (300 = 2*128 + 44).
    x_mid = jax.random.normal(k_x2, (300, 122), jnp.float32)
    out_mid = jax.block_until_ready(mlp_forward(x_mid, w1, b1, w2, b2, block_b=128))
    ref_mid = mlp_reference(x_mid, w1, b1, w2, b2)
    assert out_mid.shape == (300, 1)
    assert jnp.allclose(out_mid, ref_mid, atol=1e-2)

    # Case 3: default tiling, B>1024 -> two blocks (megacore split) + partial tail.
    x_big = jax.random.normal(k_x3, (1300, 122), jnp.float32)
    out_big = jax.block_until_ready(mlp_forward(x_big, w1, b1, w2, b2))
    ref_big = mlp_reference(x_big, w1, b1, w2, b2)
    assert out_big.shape == (1300, 1)
    assert jnp.allclose(out_big, ref_big, atol=1e-2)

    print("KERNEL_OK")
</pallas_src>

<mosaic_0001>
module attributes {stable_mosaic.version = 11 : i64} {
  func.func @mlp_kernel(%arg0: i32, %arg1: memref<32x122xf32, #tpu.memory_space<vmem>>, %arg2: memref<128x128xbf16, #tpu.memory_space<vmem>>, %arg3: memref<1x128xf32, #tpu.memory_space<vmem>>, %arg4: memref<1x128xbf16, #tpu.memory_space<vmem>>, %arg5: memref<1x1xf32, #tpu.memory_space<smem>>, %arg6: memref<1x32xf32, #tpu.memory_space<vmem>>, %arg7: memref<32x128xbf16, #tpu.memory_space<vmem>>) attributes {dimension_semantics = [#tpu.dimension_semantics<parallel>], iteration_bounds = array<i64: 1>, scalar_prefetch = 0 : i64, scratch_operands = 1 : i64, tpu.core_type = #tpu.core_type<tc>, window_params = [{transform_indices = @transform_0, window_bounds = array<i64: 32, 122>}, {pipeline_mode = #tpu.pipeline_mode<synchronous>, transform_indices = @transform_1, window_bounds = array<i64: 128, 128>}, {pipeline_mode = #tpu.pipeline_mode<synchronous>, transform_indices = @transform_2, window_bounds = array<i64: 1, 128>}, {pipeline_mode = #tpu.pipeline_mode<synchronous>, transform_indices = @transform_3, window_bounds = array<i64: 1, 128>}, {transform_indices = @transform_4, window_bounds = array<i64: 1, 1>}, {transform_indices = @transform_5, window_bounds = array<i64: 1, 32>}]} {
    %cst = arith.constant 0.000000e+00 : bf16
    %0 = vector.broadcast %cst : bf16 to vector<32x6xbf16>
    %c0 = arith.constant 0 : index
    %c122 = arith.constant 122 : index
    %1 = vector.load %arg7[%c0, %c122] : memref<32x128xbf16, #tpu.memory_space<vmem>>, vector<32x6xbf16>
    tpu.vector_store %arg7[%c0, %c122], %0 {strides = array<i32>} : memref<32x128xbf16, #tpu.memory_space<vmem>>, vector<32x6xbf16>,
    %c0_0 = arith.constant 0 : index
    %c0_1 = arith.constant 0 : index
    %2 = vector.load %arg1[%c0_0, %c0_1] : memref<32x122xf32, #tpu.memory_space<vmem>>, vector<32x122xf32>
    %3 = arith.truncf %2 : vector<32x122xf32> to vector<32x122xbf16>
    %c0_2 = arith.constant 0 : index
    %c0_3 = arith.constant 0 : index
    %4 = vector.load %arg7[%c0_2, %c0_3] : memref<32x128xbf16, #tpu.memory_space<vmem>>, vector<32x122xbf16>
    tpu.vector_store %arg7[%c0_2, %c0_3], %3 {strides = array<i32>} : memref<32x128xbf16, #tpu.memory_space<vmem>>, vector<32x122xbf16>,
    %c0_4 = arith.constant 0 : index
    %c0_5 = arith.constant 0 : index
    %5 = vector.load %arg7[%c0_4, %c0_5] : memref<32x128xbf16, #tpu.memory_space<vmem>>, vector<32x128xbf16>
    %c0_6 = arith.constant 0 : index
    %c0_7 = arith.constant 0 : index
    %6 = vector.load %arg2[%c0_6, %c0_7] : memref<128x128xbf16, #tpu.memory_space<vmem>>, vector<128x128xbf16>
    %cst_8 = arith.constant dense<0.000000e+00> : vector<32x128xf32>
    %7 = tpu.matmul %5, %6, %cst_8 {dimension_numbers = #tpu.dot_dimension_numbers<[1], [0], [0], [1], [0, 0, 1, 1], [], []>} : vector<32x128xbf16>, vector<128x128xbf16>, vector<32x128xf32> -> vector<32x128xf32>
    %c0_9 = arith.constant 0 : index
    %c0_10 = arith.constant 0 : index
    %8 = vector.load %arg3[%c0_9, %c0_10] : memref<1x128xf32, #tpu.memory_space<vmem>>, vector<1x128xf32>
    %9 = vector.broadcast %8 : vector<1x128xf32> to vector<32x128xf32>
    %10 = arith.addf %7, %9 : vector<32x128xf32>
    %cst_11 = arith.constant 0.000000e+00 : f32
    %11 = vector.broadcast %cst_11 : f32 to vector<32x128xf32>
    %12 = arith.maximumf %10, %11 : vector<32x128xf32>
    %c0_12 = arith.constant 0 : index
    %c0_13 = arith.constant 0 : index
    %13 = vector.load %arg4[%c0_12, %c0_13] : memref<1x128xbf16, #tpu.memory_space<vmem>>, vector<1x128xbf16>
    %14 = arith.truncf %12 : vector<32x128xf32> to vector<32x128xbf16>
    %cst_14 = arith.constant dense<0.000000e+00> : vector<1x32xf32>
    %15 = tpu.matmul %13, %14, %cst_14 {dimension_numbers = #tpu.dot_dimension_numbers<[1], [1], [0], [0], [0, 0, 1, 0], [], []>} : vector<1x128xbf16>, vector<32x128xbf16>, vector<1x32xf32> -> vector<1x32xf32>
    %c0_15 = arith.constant 0 : index
    %c0_16 = arith.constant 0 : index
    %16 = memref.load %arg5[%c0_15, %c0_16] : memref<1x1xf32, #tpu.memory_space<smem>>
    %17 = vector.broadcast %16 : f32 to vector<1x32xf32>
    %18 = arith.addf %15, %17 : vector<1x32xf32>
    %cst_17 = arith.constant 0.000000e+00 : f32
    %19 = vector.broadcast %cst_17 : f32 to vector<1x32xf32>
    %20 = arith.subf %19, %18 : vector<1x32xf32>
    %21 = math.exp %20 : vector<1x32xf32>
    %cst_18 = arith.constant 1.000000e+00 : f32
    %22 = vector.broadcast %cst_18 : f32 to vector<1x32xf32>
    %23 = arith.addf %22, %21 : vector<1x32xf32>
    %cst_19 = arith.constant 1.000000e+00 : f32
    %24 = vector.broadcast %cst_19 : f32 to vector<1x32xf32>
    %25 = arith.divf %24, %23 : vector<1x32xf32>
    %c0_20 = arith.constant 0 : index
    %c0_21 = arith.constant 0 : index
    %26 = vector.load %arg6[%c0_20, %c0_21] : memref<1x32xf32, #tpu.memory_space<vmem>>, vector<1x32xf32>
    tpu.vector_store %arg6[%c0_20, %c0_21], %25 {strides = array<i32>} : memref<1x32xf32, #tpu.memory_space<vmem>>, vector<1x32xf32>,
    return
  }
  func.func @transform_0(%arg0: i32) -> (i32, i32) {
    %c0_i32 = arith.constant 0 : i32
    %c0_i32_0 = arith.constant 0 : i32
    return %arg0, %c0_i32 : i32, i32
  }
  func.func @transform_1(%arg0: i32) -> (i32, i32) {
    %c0_i32 = arith.constant 0 : i32
    %c0_i32_0 = arith.constant 0 : i32
    %c0_i32_1 = arith.constant 0 : i32
    return %c0_i32, %c0_i32_0 : i32, i32
  }
  func.func @transform_2(%arg0: i32) -> (i32, i32) {
    %c0_i32 = arith.constant 0 : i32
    %c0_i32_0 = arith.constant 0 : i32
    %c0_i32_1 = arith.constant 0 : i32
    return %c0_i32, %c0_i32_0 : i32, i32
  }
  func.func @transform_3(%arg0: i32) -> (i32, i32) {
    %c0_i32 = arith.constant 0 : i32
    %c0_i32_0 = arith.constant 0 : i32
    %c0_i32_1 = arith.constant 0 : i32
    return %c0_i32, %c0_i32_0 : i32, i32
  }
  func.func @transform_4(%arg0: i32) -> (i32, i32) {
    %c0_i32 = arith.constant 0 : i32
    %c0_i32_0 = arith.constant 0 : i32
    %c0_i32_1 = arith.constant 0 : i32
    return %c0_i32, %c0_i32_0 : i32, i32
  }
  func.func @transform_5(%arg0: i32) -> (i32, i32) {
    %c0_i32 = arith.constant 0 : i32
    %c0_i32_0 = arith.constant 0 : i32
    return %c0_i32, %arg0 : i32, i32
  }
}

</mosaic_0001>

<bundles_post_ra>
// kernel: tpu_custom_call.1
= control target key start
LH: loop header
LB: loop body
LE: loop exit
PB: predicated region body
PF: predicated region fallthrough
CT: control target
= control target key end

     0   :  { %11 = vsyncpa [#allocation5], 0  ;;  %s487_s0 = inlined_call_operand.hbm [shape: f32[32,122], index: 0, kind: input, shape index: {}]   ;;  %s488_s1 = inlined_call_operand.hbm [shape: bf16[128,128], index: 1, kind: input, shape index: {}]   ;;  %s489_s2 = inlined_call_operand.vmem [shape: f32[1,128], index: 2, kind: input, shape index: {}]   ;;  %s490_s3 = inlined_call_operand.vmem [shape: bf16[1,128], index: 3, kind: input, shape index: {}]   ;;  %s491_s4 = inlined_call_operand.<no memory space> [shape: f32[1,1], index: 4, kind: input, shape index: {}]   ;;  %s492_s5 = inlined_call_operand.hbm [shape: f32[1,32], index: 5, kind: output, shape index: {}]  }
   0x1   :  { %12 = vsyncpa [#allocation8], 0 }
   0x2   :  { %13 = vsyncpa [#allocation6], 0  ;;  %s402_s18 = smov [#allocation4]   ;;  %s330_s22 = scalar_lea.hbm %s487_s0, 512 }
   0x3   :  { %s19_s19 = sshll.u32 %s402_s18, 4  ;;  %p331_p0 = scmp.ne.s32.totalorder %s487_s0, %s330_s22  ;;  %s20_s19 = int_to_ptr.vmem [resolvable:$true] %s19_s19 }
   0x4   :  { %p334_p1 = scmp.lt.u32.totalorder %s330_s22, %s487_s0 }
   0x6   :  { %p336_p2 = pnand %p334_p1, %p331_p0 }
   0x8   :  { %339 = shalt.err (!%p336_p2)
}
   0x9   :  { %s340_s27 = scalar_lea.vmem %s20_s19, 512  ;;  %p345_p4 = scmp.lt.s32.totalorder %s20_s19, %s20_s19 }
   0xa   :  { %p341_p3 = scmp.ne.s32.totalorder %s20_s19, %s340_s27  ;;  %p346_p5 = scmp.lt.s32.totalorder %s340_s27, %s340_s27 }
   0xc   :  { %p347_p6 = por %p346_p5, %p345_p4 }
   0xe   :  { %p348_p7 = pnand %p347_p6, %p341_p3 }
  0x10   :  { %351 = shalt.err (!%p348_p7)
}
  0x11   :  { %s403_s28 = smov 128   ;;  %s404_s29 = smov 8  }
  0x12   :  { %25 = dma.hbm_to_vmem [thread:$0]  %s487_s0, 512, %s20_s19, [#allocation5], %s403_s28, %s403_s28, %s404_s29  }
  0x13   :  { %s405_s7 = smov [#allocation7]   ;;  %s352_s11 = scalar_lea.hbm %s488_s1, 1024 }
  0x14   :  { %s31_s8 = sshll.u32 %s405_s7, 4  ;;  %p353_p8 = scmp.ne.s32.totalorder %s488_s1, %s352_s11  ;;  %s32_s8 = int_to_ptr.vmem [resolvable:$true] %s31_s8 }
  0x15   :  { %p356_p9 = scmp.lt.u32.totalorder %s352_s11, %s488_s1 }
  0x17   :  { %p358_p10 = pnand %p356_p9, %p353_p8 }
  0x19   :  { %361 = shalt.err (!%p358_p10)
}
  0x1a   :  { %s362_s16 = scalar_lea.vmem %s32_s8, 1024  ;;  %p367_p12 = scmp.lt.s32.totalorder %s32_s8, %s32_s8 }
  0x1b   :  { %p363_p11 = scmp.ne.s32.totalorder %s32_s8, %s362_s16  ;;  %p368_p13 = scmp.lt.s32.totalorder %s362_s16, %s362_s16 }
  0x1d   :  { %p369_p0 = por %p368_p13, %p367_p12 }
  0x1f   :  { %p370_p1 = pnand %p369_p0, %p363_p11 }
  0x21   :  { %373 = shalt.err (!%p370_p1)
}
  0x22   :  { %s406_s0 = smov 64   ;;  %s407_s17 = smov 4  }
  0x23   :  { %37 = dma.hbm_to_vmem [thread:$0]  %s488_s1, 1024, %s32_s8, [#allocation8], %s406_s0, %s406_s0, %s407_s17  }
  0x24   :  { %396 = dma.done.wait [#allocation5], 512  }
  0x25   :  { %397 = vsyncadd [#allocation5], 4294966784 }
  0x26   :  { %398 = dma.done.wait [#allocation8], 1024  }
  0x27   :  { %399 = vsyncadd [#allocation8], 4294966272  ;;  %vm51_vm0 = vcmask 1048528   ;;  %v408_v0 = vmov 0   ;;  %v318_v1 = vld [vmem:[#allocation7] sm:$0xff]   ;;  %v319_v2 = vld [vmem:[#allocation7 + $0x8] sm:$0xff]   ;;  %v193_v34 = vstv %s491_s4 }
  0x28   :  { %52 = vst.msk [vmem:[#allocation2] sm:$0xff] %vm51_vm0, %v408_v0  ;;  %53 = vst.msk [vmem:[#allocation2 + $0x8] sm:$0xff] %vm51_vm0, %v408_v0  ;;  %280 = vmatprep.subr.bf16.mxu0 %v318_v1  ;;  %v320_v3 = vld [vmem:[#allocation7 + $0x10] sm:$0xff]   ;;  %v321_v4 = vld [vmem:[#allocation7 + $0x18] sm:$0xff]   ;;  %vm60_vm1 = vcmask 998400   ;;  %v409_v17 = vmov 0.0  }
  0x29   :  { %281 = vmatpush3.bf16.msra.mxu0 %v318_v1  ;;  %v54_v5 = vld [vmem:[#allocation4] sm:$0xff]  ;;  %v55_v6 = vld [vmem:[#allocation4 + $0x8] sm:$0xff]  ;;  %v56_v7 = vld [vmem:[#allocation4 + $0x10] sm:$0xff]  ;;  %300 = vmatprep.subr.bf16.mxu1 %v409_v17  ;;  %vm410_vm2 = vmmov 0   ;;  %s411_s24 = smov [#allocation9]   ;;  %vm240_vm3 = vcmask 253952  }
  0x2a   :  { %282 = vmatprep.subr.bf16.mxu0 %v319_v2  ;;  %v58_v8 = vpack.c.bf16 %v55_v6, %v54_v5  ;;  %v57_v9 = vld [vmem:[#allocation4 + $0x18] sm:$0xff]  ;;  %v322_v11 = vld [vmem:[#allocation7 + $0x20] sm:$0xff]   ;;  %v323_v12 = vld [vmem:[#allocation7 + $0x28] sm:$0xff]   ;;  %304 = vmatprep.mubr.msk.bf16.mxu1 %vm410_vm2, %v409_v17  ;;  %s248_s25 = sshll.u32 %s411_s24, 4  ;;  %s249_s25 = int_to_ptr.vmem [resolvable:$true] %s248_s25 }
  0x2b   :  { %v59_v10 = vpack.c.bf16 %v57_v9, %v56_v7  ;;  %v324_v14 = vld [vmem:[#allocation7 + $0x30] sm:$0xff]   ;;  %v325_v15 = vld [vmem:[#allocation7 + $0x38] sm:$0xff]   ;;  %s378_s4 = scalar_lea.vmem %s249_s25, 32  ;;  %p379_p3 = scmp.lt.s32.totalorder %s249_s25, %s249_s25 }
  0x2c   :  { %61 = vst.msk [vmem:[#allocation2] sm:$0xff] %vm60_vm1, %v58_v8  ;;  %v258_v18 = vld [vmem:[%s489_s2] ss:$0 sm:$0xff] }
  0x2d   :  { %283 = vmatpush3.bf16.msra.mxu0 %v319_v2  ;;  %62 = vst.msk [vmem:[#allocation2 + $0x8] sm:$0xff] %vm60_vm1, %v59_v10  ;;  %v189_v33 = vld [vmem:[%s490_s3] sm:$0x1]  ;;  %s374_s3 = scalar_lea.vmem %s249_s25, 16 }
  0x2e   :  { %284 = vmatprep.subr.bf16.mxu0 %v320_v3  ;;  %p375_p2 = scmp.ne.s32.totalorder %s249_s25, %s374_s3  ;;  %p380_p4 = scmp.lt.s32.totalorder %s378_s4, %s374_s3 }
  0x30   :  { %p381_p5 = por %p380_p4, %p379_p3 }
  0x31   :  { %285 = vmatpush3.bf16.msra.mxu0 %v320_v3 }
  0x32   :  { %286 = vmatprep.subr.bf16.mxu0 %v321_v4  ;;  %p382_p6 = pnand %p381_p5, %p375_p2 }
  0x33   :  { %v63_v13 = vld [vmem:[#allocation2] sm:$0xff] }
  0x34   :  { %296 = vmatprep.mubr.bf16.mxu0 %v63_v13  ;;  %v64_v16 = vld [vmem:[#allocation2 + $0x8] sm:$0xff] }
  0x35   :  { %287 = vmatpush3.bf16.msra.mxu0 %v321_v4 }
  0x36   :  { %288 = vmatprep.subr.bf16.mxu0 %v322_v11 }
  0x39   :  { %289 = vmatpush3.bf16.msra.mxu0 %v322_v11 }
  0x3a   :  { %290 = vmatprep.subr.bf16.mxu0 %v323_v12 }
  0x3d   :  { %291 = vmatpush3.bf16.msra.mxu0 %v323_v12 }
  0x3e   :  { %292 = vmatprep.subr.bf16.mxu0 %v324_v14 }
  0x41   :  { %293 = vmatpush3.bf16.msra.mxu0 %v324_v14 }
  0x42   :  { %294 = vmatprep.subr.bf16.mxu0 %v325_v15 }
  0x45   :  { %295 = vmatpush3.bf16.msra.mxu0 %v325_v15 }
  0x48   :  { %297 = vmatmul.mubr.bf16.vlgmr.msra.gmra.mrb[0].mxu0 %v64_v16 }
 0x11b   :  { %v298_v19 = vpop.f32.mrb[0].mxu0 }
 0x11c   :  { %v179_v20 = vadd.f32 %v298_v19, %v258_v18  ;;  %v170_v21 = vpop.f32.mrb[1].mxu0 }
 0x11d   :  { %v171_v22 = vadd.f32 %v258_v18, %v170_v21  ;;  %v299_v23 = vpop.f32.mrb[2].mxu0 }
 0x11e   :  { %v182_v24 = vadd.f32 %v299_v23, %v258_v18  ;;  %v173_v25 = vpop.f32.mrb[3].mxu0  ;;  %v187_v27 = vmax.f32 %v179_v20, 0.0 }
 0x11f   :  { %v174_v26 = vadd.f32 %v258_v18, %v173_v25  ;;  %v185_v29 = vmax.f32 %v171_v22, 0.0 }
 0x120   :  { %v188_v28 = vmax.f32 %v182_v24, 0.0 }
 0x121   :  { %v186_v30 = vmax.f32 %v174_v26, 0.0 }
 0x122   :  { %v191_v31 = vpack.c.bf16 %v188_v28, %v187_v27 }
 0x123   :  { %v190_v32 = vpack.c.bf16 %v186_v30, %v185_v29 }
 0x125   :  { %301 = vmatpush3.bf16.xpose.msra.mxu1 %v190_v32 }
 0x126   :  { %302 = vmatprep.subr.bf16.mxu1 %v409_v17 }
 0x12d   :  { %303 = vmatpush3.bf16.xpose.msra.mxu1 %v191_v31 }
 0x134   :  { %305 = vmatmul.mubr.bf16.vlgmr.msra.gmra.mrb[0].mxu1 %v189_v33 }
 0x207   :  { %v228_v35 = vpop.f32.mrb[0].mxu1 }
 0x208   :  { %v229_v36 = vadd.f32 %v228_v35, %v193_v34  ;;  %v306_v37 = vpop.f32.mrb[1].mxu1 }
 0x209   :  { %v231_v38 = vpop.f32.mrb[2].mxu1 }
 0x20a   :  { %v234_v39 = vsub.f32 0.0, %v229_v36  ;;  %v307_v40 = vpop.f32.mrb[3].mxu1 }
 0x20c   :  { %v235_v41 = vmul.f32 1.442695, %v234_v39 }
 0x20e   :  { %326 = vpow2.f32 %v235_v41 }
 0x218   :  { %v327_v42 = vpop.eup %326 }
 0x219   :  { %v237_v43 = vadd.f32 1.0, %v327_v42 }
 0x21b   :  { %328 = vrcp.f32 %v237_v43 }
 0x225   :  { %v329_v44 = vpop.eup %328 }
 0x226   :  { %241 = vst.msk [vmem:[#allocation9] sm:$0x1] %vm240_vm3, %v329_v44 }
 0x227   :  { %385 = shalt.err (!%p382_p6)
}
 0x228   :  { %s386_s28 = scalar_lea.hbm %s492_s5, 16 }
 0x229   :  { %p387_p7 = scmp.ne.s32.totalorder %s492_s5, %s386_s28  ;;  %p390_p8 = scmp.lt.u32.totalorder %s386_s28, %s492_s5 }
 0x22b   :  { %p392_p9 = pnand %p390_p8, %p387_p7 }
 0x22d   :  { %395 = shalt.err (!%p392_p9)
}
 0x22e   :  { %251 = dma.vmem_to_hbm [thread:$0]  %s249_s25, 16, %s492_s5, [#allocation6]  }
 0x22f   :  { %400 = dma.done.wait [#allocation6], 16  }
 0x230   :  { %401 = vsyncadd [#allocation6], 4294967280 }
 0x231   :  { %255 = vsyncpa [#allocation5], 1 }
 0x232   :  { %256 = vsyncpa [#allocation8], 1 }
 0x233   :  { %257 = vsyncpa [#allocation6], 1 }

</bundles_post_ra>
